<compile_context>
chip_gen: v5e
topology: v5e:2x2
jax: 0.10.0
libtpu: 0.0.40
codegen_flags: <defaults>
</compile_context>

<pallas_src>
import functools

import jax
import jax.numpy as jnp
import numpy as np
from jax.experimental import pallas as pl
from jax.experimental.pallas import tpu as pltpu


def _round_up(x: int, m: int) -> int:
    return ((x + m - 1) // m) * m


def _emb_kernel(idx_ref, tab_ref, out_ref, *, offsets):
    # idx_ref: (TB, P)      int32  -- per-feature local indices for this batch tile
    # tab_ref: (Vtot, Ppad) f32    -- packed tables, resident across the whole grid
    # out_ref: (TB, Ppad)   f32    -- lane-dense output tile (only [:, :P] is meaningful)
    idx = idx_ref[...]
    tab = tab_ref[...]
    tb = idx.shape[0]
    vtot = tab.shape[0]

    # Lane-wide iota built once and reused by every feature's compare.
    iota_v = jax.lax.broadcasted_iota(jnp.int32, (tb, vtot), 1)

    # 0/1 one-hot over the concatenated vocab.  Per-feature vocab ranges are disjoint, so
    # summing the per-feature one-hots is exact.  P is small and static -> unrolled loop,
    # keeping the live intermediate at (TB, Vtot) instead of (TB, P, Vtot).
    onehot = jnp.zeros((tb, vtot), dtype=jnp.float32)
    for p, off in enumerate(offsets):
        col = idx[:, p:p + 1] + off                        # (TB, 1) global vocab index
        onehot = onehot + (iota_v == col).astype(jnp.float32)

    # One MXU matmul gathers all P features at once; result is naturally lane-dense.
    # TODO(synk): nn.Embedding raises on out-of-range indices; here such rows silently
    # gather 0.0 (no clean in-kernel error path on TPU).
    out_ref[...] = jnp.dot(onehot, tab, preferred_element_type=jnp.float32)


def _choose_tile(batch: int, vtot: int) -> int:
    # Keep the (TB, Vtot) f32/int32 in-kernel intermediates around <= 4 MiB each and TB a
    # multiple of 8 (sublane constraint).  Works within v5e/v6e/v7x scoped-VMEM defaults.
    cap = (4 * 1024 * 1024) // (4 * max(vtot, 1))
    tb = min(512, max(8, cap), _round_up(batch, 8))
    return max(8, (tb // 8) * 8)


def embedding_generator(categorical_idx: jax.Array,
                        tables: jax.Array,
                        offsets: tuple) -> jax.Array:
    """categorical_idx: (B, P) int32; tables: (Vtot, Ppad) f32 packed -> (B, P) f32."""
    B, P = categorical_idx.shape
    Vtot, Ppad = tables.shape

    TB = _choose_tile(B, Vtot)
    B_pad = _round_up(B, TB)
    if B_pad != B:
        # Pad rows with index 0 (valid for feature 0 after offset); sliced off below.
        categorical_idx = jnp.pad(categorical_idx, ((0, B_pad - B), (0, 0)))

    kernel = functools.partial(_emb_kernel, offsets=offsets)
    out = pl.pallas_call(
        kernel,
        out_shape=jax.ShapeDtypeStruct((B_pad, Ppad), jnp.float32),
        grid=(B_pad // TB,),
        in_specs=[
            pl.BlockSpec((TB, P), lambda i: (i, 0)),          # batch-tiled indices
            pl.BlockSpec((Vtot, Ppad), lambda i: (0, 0)),     # constant block -> resident
        ],
        out_specs=pl.BlockSpec((TB, Ppad), lambda i: (i, 0)),  # lane-dense output tile
        compiler_params=pltpu.CompilerParams(
            dimension_semantics=("parallel",)),                # megacore-shard on v7x
    )(categorical_idx, tables)
    return out[:B, :P]


def build_tables(key, cat_dims, lane_pad=128):
    """Pack per-feature Embedding(cat_dim, 1) weights (N(0,1) init like nn.Embedding) into
    one (Vtot, Ppad) matrix: W[offset_p + i, p] = table_p[i], zero elsewhere."""
    P = len(cat_dims)
    offsets = [0]
    for cd in cat_dims[:-1]:
        offsets.append(offsets[-1] + cd)
    Vtot = _round_up(sum(cat_dims), lane_pad)
    Ppad = _round_up(P, lane_pad)
    W = np.zeros((Vtot, Ppad), dtype=np.float32)
    keys = jax.random.split(key, P)
    for p, cd in enumerate(cat_dims):
        w = jax.random.normal(keys[p], (cd,), dtype=jnp.float32)  # Embedding(cd, 1) weights
        W[offsets[p]:offsets[p] + cd, p] = np.asarray(w)
    return jnp.asarray(W), tuple(int(o) for o in offsets)


if __name__ == "__main__":
    config = {
        "cat_features_idxs": [0, 1, 2, 3],
        "cat_dim": [5, 7, 3, 11],
    }
    batch = 8
    P = len(config["cat_features_idxs"])

    key = jax.random.PRNGKey(0)
    k_tab, k_idx = jax.random.split(key)

    tables, offsets = build_tables(k_tab, config["cat_dim"])      # (Vtot, Ppad) f32

    # Deterministic integer indices, each column bounded by its cat_dim.
    idx_keys = jax.random.split(k_idx, P)
    cols = [jax.random.randint(idx_keys[p], (batch,), 0, cd, dtype=jnp.int32)
            for p, cd in enumerate(config["cat_dim"])]
    categorical_idx = jnp.stack(cols, axis=1)                     # (B, P) int32

    out = embedding_generator(categorical_idx, tables, offsets)
    out = jax.block_until_ready(out)

    # Reference: plain gather on the packed table.
    gidx = np.asarray(categorical_idx) + np.asarray(offsets, dtype=np.int32)[None, :]
    ref = np.asarray(tables)[gidx, np.arange(P)[None, :]]         # (B, P)

    assert out.shape == (batch, P) and out.dtype == jnp.float32
    np.testing.assert_allclose(np.asarray(out), ref, rtol=1e-5, atol=1e-6)

    print("KERNEL_OK")
</pallas_src>

<mosaic_0001>
module attributes {stable_mosaic.version = 11 : i64} {
  func.func @_emb_kernel(%arg0: i32, %arg1: memref<8x4xi32, #tpu.memory_space<vmem>>, %arg2: memref<128x128xf32, #tpu.memory_space<vmem>>, %arg3: memref<8x128xf32, #tpu.memory_space<vmem>>) attributes {dimension_semantics = [#tpu.dimension_semantics<parallel>], iteration_bounds = array<i64: 1>, scalar_prefetch = 0 : i64, scratch_operands = 0 : i64, tpu.core_type = #tpu.core_type<tc>, window_params = [{transform_indices = @transform_0, window_bounds = array<i64: 8, 4>}, {pipeline_mode = #tpu.pipeline_mode<synchronous>, transform_indices = @transform_1, window_bounds = array<i64: 128, 128>}, {transform_indices = @transform_2, window_bounds = array<i64: 8, 128>}]} {
    %c0 = arith.constant 0 : index
    %c0_0 = arith.constant 0 : index
    %0 = vector.load %arg1[%c0, %c0_0] : memref<8x4xi32, #tpu.memory_space<vmem>>, vector<8x4xi32>
    %c0_1 = arith.constant 0 : index
    %c0_2 = arith.constant 0 : index
    %1 = vector.load %arg2[%c0_1, %c0_2] : memref<128x128xf32, #tpu.memory_space<vmem>>, vector<128x128xf32>
    %2 = tpu.iota {dimensions = array<i32: 1>} : vector<8x128xi32>
    %cst = arith.constant 0.000000e+00 : f32
    %3 = vector.broadcast %cst : f32 to vector<8x128xf32>
    %4 = vector.extract_strided_slice %0 {offsets = [0, 0], sizes = [8, 1], strides = [1, 1]} : vector<8x4xi32> to vector<8x1xi32>
    %c0_i32 = arith.constant 0 : i32
    %5 = vector.broadcast %c0_i32 : i32 to vector<8x1xi32>
    %6 = arith.addi %4, %5 : vector<8x1xi32>
    %7 = vector.broadcast %6 : vector<8x1xi32> to vector<8x128xi32>
    %8 = arith.cmpi eq, %2, %7 : vector<8x128xi32>
    %9 = arith.extui %8 : vector<8x128xi1> to vector<8x128xi32>
    %10 = arith.sitofp %9 : vector<8x128xi32> to vector<8x128xf32>
    %11 = arith.addf %3, %10 : vector<8x128xf32>
    %12 = vector.extract_strided_slice %0 {offsets = [0, 1], sizes = [8, 1], strides = [1, 1]} : vector<8x4xi32> to vector<8x1xi32>
    %c5_i32 = arith.constant 5 : i32
    %13 = vector.broadcast %c5_i32 : i32 to vector<8x1xi32>
    %14 = arith.addi %12, %13 : vector<8x1xi32>
    %15 = vector.broadcast %14 : vector<8x1xi32> to vector<8x128xi32>
    %16 = arith.cmpi eq, %2, %15 : vector<8x128xi32>
    %17 = arith.extui %16 : vector<8x128xi1> to vector<8x128xi32>
    %18 = arith.sitofp %17 : vector<8x128xi32> to vector<8x128xf32>
    %19 = arith.addf %11, %18 : vector<8x128xf32>
    %20 = vector.extract_strided_slice %0 {offsets = [0, 2], sizes = [8, 1], strides = [1, 1]} : vector<8x4xi32> to vector<8x1xi32>
    %c12_i32 = arith.constant 12 : i32
    %21 = vector.broadcast %c12_i32 : i32 to vector<8x1xi32>
    %22 = arith.addi %20, %21 : vector<8x1xi32>
    %23 = vector.broadcast %22 : vector<8x1xi32> to vector<8x128xi32>
    %24 = arith.cmpi eq, %2, %23 : vector<8x128xi32>
    %25 = arith.extui %24 : vector<8x128xi1> to vector<8x128xi32>
    %26 = arith.sitofp %25 : vector<8x128xi32> to vector<8x128xf32>
    %27 = arith.addf %19, %26 : vector<8x128xf32>
    %28 = vector.extract_strided_slice %0 {offsets = [0, 3], sizes = [8, 1], strides = [1, 1]} : vector<8x4xi32> to vector<8x1xi32>
    %c15_i32 = arith.constant 15 : i32
    %29 = vector.broadcast %c15_i32 : i32 to vector<8x1xi32>
    %30 = arith.addi %28, %29 : vector<8x1xi32>
    %31 = vector.broadcast %30 : vector<8x1xi32> to vector<8x128xi32>
    %32 = arith.cmpi eq, %2, %31 : vector<8x128xi32>
    %33 = arith.extui %32 : vector<8x128xi1> to vector<8x128xi32>
    %34 = arith.sitofp %33 : vector<8x128xi32> to vector<8x128xf32>
    %35 = arith.addf %27, %34 : vector<8x128xf32>
    %cst_3 = arith.constant dense<0.000000e+00> : vector<8x128xf32>
    %36 = tpu.matmul %35, %1, %cst_3 {dimension_numbers = #tpu.dot_dimension_numbers<[1], [0], [0], [1], [0, 0, 1, 1], [], []>} : vector<8x128xf32>, vector<128x128xf32>, vector<8x128xf32> -> vector<8x128xf32>
    %c0_4 = arith.constant 0 : index
    %c0_5 = arith.constant 0 : index
    %37 = vector.load %arg3[%c0_4, %c0_5] : memref<8x128xf32, #tpu.memory_space<vmem>>, vector<8x128xf32>
    tpu.vector_store %arg3[%c0_4, %c0_5], %36 {strides = array<i32>} : memref<8x128xf32, #tpu.memory_space<vmem>>, vector<8x128xf32>,
    return
  }
  func.func @transform_0(%arg0: i32) -> (i32, i32) {
    %c0_i32 = arith.constant 0 : i32
    %c0_i32_0 = arith.constant 0 : i32
    return %arg0, %c0_i32 : i32, i32
  }
  func.func @transform_1(%arg0: i32) -> (i32, i32) {
    %c0_i32 = arith.constant 0 : i32
    %c0_i32_0 = arith.constant 0 : i32
    %c0_i32_1 = arith.constant 0 : i32
    return %c0_i32, %c0_i32_0 : i32, i32
  }
  func.func @transform_2(%arg0: i32) -> (i32, i32) {
    %c0_i32 = arith.constant 0 : i32
    %c0_i32_0 = arith.constant 0 : i32
    return %arg0, %c0_i32 : i32, i32
  }
}

</mosaic_0001>

<bundles_post_ra>
// kernel: tpu_custom_call.1
= control target key start
LH: loop header
LB: loop body
LE: loop exit
PB: predicated region body
PF: predicated region fallthrough
CT: control target
= control target key end

     0   :  { %7 = vsyncpa [#allocation3], 0  ;;  %s219_s0 = inlined_call_operand.vmem [shape: s32[8,4], index: 0, kind: input, shape index: {}]   ;;  %s220_s1 = inlined_call_operand.hbm [shape: f32[128,128], index: 1, kind: input, shape index: {}]   ;;  %s221_s2 = inlined_call_operand.hbm [shape: f32[8,128], index: 2, kind: output, shape index: {}]  }
   0x1   :  { %8 = vsyncpa [#allocation4], 0  ;;  %s15_s11 = sshll.u32 %s220_s1, 4  ;;  %s186_s12 = smov [#allocation2]   ;;  %s16_s11 = int_to_ptr.hbm [resolvable:$true] %s15_s11 }
   0x2   :  { %s17_s13 = sshll.u32 %s186_s12, 4  ;;  %s187_s14 = smov 128   ;;  %s18_s13 = int_to_ptr.vmem [resolvable:$true] %s17_s13 }
   0x3   :  { %s188_s15 = smov 8  }
   0x4   :  { %23 = dma.hbm_to_vmem [thread:$0]  %s16_s11, 2048, %s18_s13, [#allocation3], %s187_s14, %s187_s14, %s188_s15  }
   0x5   :  { %182 = dma.done.wait [#allocation3], 2048  }
   0x6   :  { %183 = vsyncadd [#allocation3], 4294965248  ;;  %v189_v0 = vmov 0   ;;  %v190_v1 = vmov 2   ;;  %v28_v2 = vld [vmem:[%s219_s0] sm:$0xff]  ;;  %v44_v3 = vld [vmem:[#allocation2 + $0x78] sm:$0xff]  ;;  %v45_v24 = vlaneseq }
   0x7   :  { %129 = vset.pattern.permute.xlu0 %v189_v0  ;;  %131 = vset.pattern.permute.xlu1 %v190_v1  ;;  %v43_v4 = vld [vmem:[#allocation2 + $0x70] sm:$0xff]  ;;  %v62_v5 = vadd.s32 12, %v28_v2  ;;  %v42_v6 = vld [vmem:[#allocation2 + $0x68] sm:$0xff]  ;;  %v41_v7 = vld [vmem:[#allocation2 + $0x60] sm:$0xff]  ;;  %v54_v8 = vadd.s32 5, %v28_v2  ;;  %v70_v10 = vadd.s32 15, %v28_v2 }
   0x8   :  { %48 = vperm.xlu0 %129, %v28_v2   ;;  %78 = vmatpush.msra.mxu0 %v44_v3  ;;  %v40_v9 = vld [vmem:[#allocation2 + $0x58] sm:$0xff]  ;;  %v39_v11 = vld [vmem:[#allocation2 + $0x50] sm:$0xff]  ;;  %v191_v12 = vmov 1   ;;  %v38_v13 = vld [vmem:[#allocation2 + $0x48] sm:$0xff]  ;;  %v192_v14 = vmov 3   ;;  %v46_v27 = vand.u32 127, %v45_v24 }
   0x9   :  { %64 = vperm.xlu1 %131, %v62_v5   ;;  %v37_v15 = vld [vmem:[#allocation2 + $0x40] sm:$0xff]  ;;  %v36_v16 = vld [vmem:[#allocation2 + $0x38] sm:$0xff]  ;;  %v35_v17 = vld [vmem:[#allocation2 + $0x30] sm:$0xff]  ;;  %v193_v29 = vmov 0.0   ;;  %s194_s0 = smov [#allocation5]   ;;  %s106_s20 = sshll.u32 %s221_s2, 4  ;;  %s107_s20 = int_to_ptr.hbm [resolvable:$true] %s106_s20 }
   0xa   :  { %79 = vmatpush.msra.mxu0 %v43_v4  ;;  %v34_v18 = vld [vmem:[#allocation2 + $0x28] sm:$0xff]  ;;  %v33_v19 = vld [vmem:[#allocation2 + $0x20] sm:$0xff]  ;;  %v32_v20 = vld [vmem:[#allocation2 + $0x18] sm:$0xff]  ;;  %s104_s1 = sshll.u32 %s194_s0, 4  ;;  %s105_s1 = int_to_ptr.vmem [resolvable:$true] %s104_s1 }
   0xb   :  { %v31_v21 = vld [vmem:[#allocation2 + $0x10] sm:$0xff]  ;;  %v30_v22 = vld [vmem:[#allocation2 + $0x8] sm:$0xff]  ;;  %v29_v23 = vld [vmem:[#allocation2] sm:$0xff] }
   0xc   :  { %80 = vmatpush.msra.mxu0 %v42_v6 }
   0xe   :  { %81 = vmatpush.msra.mxu0 %v41_v7 }
  0x10   :  { %130 = vset.pattern.permute.xlu0 %v191_v12  ;;  %82 = vmatpush.msra.mxu0 %v40_v9 }
  0x11   :  { %56 = vperm.xlu0 %130, %v54_v8   ;;  %132 = vset.pattern.permute.xlu1 %v192_v14 }
  0x12   :  { %83 = vmatpush.msra.mxu0 %v39_v11  ;;  %72 = vperm.xlu1 %132, %v70_v10  }
  0x14   :  { %84 = vmatpush.msra.mxu0 %v38_v13 }
  0x16   :  { %85 = vmatpush.msra.mxu0 %v37_v15 }
  0x18   :  { %86 = vmatpush.msra.mxu0 %v36_v16 }
  0x19   :  { %133 = vset.pattern.permute.xlu0 %v192_v14 }
  0x1a   :  { %87 = vmatpush.msra.mxu0 %v35_v17 }
  0x1c   :  { %88 = vmatpush.msra.mxu0 %v34_v18 }
  0x1e   :  { %89 = vmatpush.msra.mxu0 %v33_v19 }
  0x20   :  { %90 = vmatpush.msra.mxu0 %v32_v20 }
  0x22   :  { %91 = vmatpush.msra.mxu0 %v31_v21 }
  0x24   :  { %92 = vmatpush.msra.mxu0 %v30_v22 }
  0x26   :  { %93 = vmatpush.msra.mxu0 %v29_v23 }
  0x7a   :  { %v49_v25 = vpop.permute.xlu0 %48 }
  0x7b   :  { %v65_v26 = vpop.permute.xlu1 %64  ;;  %vm50_vm0 = vcmp.eq.s32.totalorder %v46_v27, %v49_v25 }
  0x7c   :  { %vm66_vm1 = vcmp.eq.s32.totalorder %v46_v27, %v65_v26  ;;  %v116_v30 = vsel %vm50_vm0, 1.0, %v193_v29 }
  0x7d   :  { %v118_v34 = vsel %vm66_vm1, 1.0, %v193_v29 }
  0x83   :  { %v57_v28 = vpop.permute.xlu0 %56 }
  0x84   :  { %vm58_vm2 = vcmp.eq.s32.totalorder %v46_v27, %v57_v28  ;;  %v73_v32 = vpop.permute.xlu1 %72 }
  0x85   :  { %v117_v31 = vsel %vm58_vm2, 1.0, %v193_v29  ;;  %vm74_vm3 = vcmp.eq.s32.totalorder %v46_v27, %v73_v32 }
  0x86   :  { %v61_v33 = vadd.f32 %v117_v31, %v116_v30  ;;  %v119_v35 = vsel %vm74_vm3, 1.0, %v193_v29 }
  0x88   :  { %v69_v36 = vadd.f32 %v118_v34, %v61_v33 }
  0x8a   :  { %v77_v37 = vadd.f32 %v119_v35, %v69_v36 }
  0x8c   :  { %94 = vmatmul.f32.vlgmr.msra.gmra.mxu0 %v77_v37 }
 0x109   :  { %v95_v38 = vpop.f32.mrf.mxu0 }
 0x10a   :  { %98 = vst [vmem:[#allocation5] sm:$0xff] %v95_v38 }
 0x10b   :  { %109 = dma.vmem_to_hbm [thread:$0]  %s105_s1, 128, %s107_s20, [#allocation4]  }
 0x10c   :  { %184 = dma.done.wait [#allocation4], 128  }
 0x10d   :  { %185 = vsyncadd [#allocation4], 4294967168 }
 0x10e   :  { %114 = vsyncpa [#allocation3], 1 }
 0x10f   :  { %115 = vsyncpa [#allocation4], 1 }

</bundles_post_ra>
